<compile_context>
chip_gen: v5e
topology: v5e:2x2
jax: 0.10.0
libtpu: 0.0.40
codegen_flags: <defaults>
</compile_context>

<pallas_src>
import jax
import jax.numpy as jnp
from jax.experimental import pallas as pl
from jax.experimental.pallas import tpu as pltpu


_TM_MAX = 512  # fixed, 128-aligned T tile; last block is ragged (pl.cdiv grid)


# ----------------------------------------------------------------------------
# Pallas kernel: per (batch, T-tile) classifier head
# ----------------------------------------------------------------------------
def classifier_head_kernel(h_ref, w_ref, lb_ref, o_ref):
    # h_ref:  (1, TM, C)  bf16  hidden-state tile for this (b, t) grid step
    # w_ref:  (C, Lp)     bf16  all-tokens weight half, zero-padded to Lp lanes
    # lb_ref: (1, 1, Lp)  f32   precomputed last-token contribution + bias (per b)
    # o_ref:  (1, TM, Lp) f32   padded output logits tile
    logits = jnp.dot(h_ref[0], w_ref[...],
                     preferred_element_type=jnp.float32)        # (TM, Lp) f32 acc
    o_ref[0] = logits + lb_ref[0]                               # (1, Lp) broadcasts


def _vmem_limit_bytes():
    # 3/4 of physical VMEM, capped at 96 MiB: v5e/v6e -> 96 MiB (raises the
    # 16/32 MiB default scoped limits), v7x -> 48 MiB (under 64 MiB physical).
    try:
        cap = pltpu.get_tpu_info().vmem_capacity_bytes
    except Exception:
        cap = 64 << 20  # conservative (v7x per-TC physical)
    return int(min(cap * 3 // 4, 96 << 20))


def _pick_tm(T):
    # Fixed 128-aligned tile for long sequences; single full-T block otherwise
    # (block shape == full array dim is always layout-legal).
    return _TM_MAX if T >= _TM_MAX else T


# ----------------------------------------------------------------------------
# One-time weight preparation (hoisted out of the per-call wrapper)
# ----------------------------------------------------------------------------
def prepare_classifier_head(cls_w, cls_b, hidden_size):
    """cls_w: [num_labels, 2C] f32 (PyTorch nn.Linear layout); cls_b: [L]."""
    C = hidden_size
    L = cls_w.shape[0]
    Lp = max(128, ((L + 127) // 128) * 128)       # lane-dense padded label dim

    # All-tokens weight half: (C, L) bf16, zero-padded to Lp lanes.
    w_all = jnp.transpose(cls_w[:, :C]).astype(jnp.bfloat16)
    w_all_p = jnp.zeros((C, Lp), jnp.bfloat16).at[:, :L].set(w_all)

    # Last-token weight half stays f32 (tiny (B, L) matmul done in the wrapper).
    w_last = jnp.transpose(cls_w[:, C:]).astype(jnp.float32)     # (C, L)
    bias = cls_b.astype(jnp.float32)

    return {"w_all_p": w_all_p, "w_last": w_last, "bias": bias, "L": L, "Lp": Lp}


# ----------------------------------------------------------------------------
# Classifier-head wrapper
# ----------------------------------------------------------------------------
def classifier_head(hidden, head):
    """hidden: [B, T, C] bf16; head: output of prepare_classifier_head."""
    B, T, C = hidden.shape
    L, Lp = head["L"], head["Lp"]
    w_all_p = head["w_all_p"]

    # Hoisted last-token contribution + bias: tiny (B, L) f32 matmul, padded
    # to the lane-dense Lp so padded output columns stay exactly zero.
    last = hidden[:, -1, :].astype(jnp.float32)                  # (B, C)
    lb = last @ head["w_last"] + head["bias"]                    # (B, L)
    lb_p = jnp.zeros((B, 1, Lp), jnp.float32).at[:, 0, :L].set(lb)

    TM = _pick_tm(T)
    grid = (B, pl.cdiv(T, TM))                                   # ragged last block

    cost = pl.CostEstimate(
        flops=2 * B * T * C * Lp,
        transcendentals=0,
        bytes_accessed=B * T * C * 2 + C * Lp * 2 + B * T * Lp * 4,
    )

    def run(w_spec):
        return pl.pallas_call(
            classifier_head_kernel,
            out_shape=jax.ShapeDtypeStruct((B, T, Lp), jnp.float32),
            grid_spec=pltpu.PrefetchScalarGridSpec(
                num_scalar_prefetch=0,
                grid=grid,
                in_specs=[
                    pl.BlockSpec((1, TM, C), lambda bi, ti: (bi, ti, 0)),
                    w_spec,                                      # resident weight
                    pl.BlockSpec((1, 1, Lp), lambda bi, ti: (bi, 0, 0)),
                ],
                out_specs=pl.BlockSpec((1, TM, Lp), lambda bi, ti: (bi, ti, 0)),
            ),
            compiler_params=pltpu.CompilerParams(
                dimension_semantics=("parallel", "parallel"),
                vmem_limit_bytes=_vmem_limit_bytes()),
            cost_estimate=cost,
        )(hidden, w_all_p, lb_p)

    w_index_map = lambda bi, ti: (0, 0)
    try:
        # Single-buffer the resident weight block (constant index_map =>
        # fetched once); saves a dead second VMEM buffer (~1.3 MiB at C=5120).
        out_padded = run(pl.BlockSpec((C, Lp), w_index_map,
                                      pipeline_mode=pl.Buffered(1)))
    except Exception:
        # Older/newer builds that don't accept pipeline_mode on this path.
        out_padded = run(pl.BlockSpec((C, Lp), w_index_map))

    # Consumers that tolerate the 128-padded label dim can take out_padded
    # directly; slice here to match the module's (B, T, num_labels) contract.
    return out_padded[..., :L]


# ----------------------------------------------------------------------------
# Synthetic frozen base model (stand-in for AutoModelForCausalLM hidden states)
# ----------------------------------------------------------------------------
def synthetic_base_model(input_ids, attention_mask, embed_table, mix_w):
    h = embed_table[input_ids]                                    # (B, T, C) bf16
    h = h * attention_mask[..., None].astype(jnp.bfloat16)
    h = jnp.einsum("btc,cd->btd", h.astype(jnp.float32),
                   mix_w.astype(jnp.float32))
    return h.astype(jnp.bfloat16)


# ----------------------------------------------------------------------------
# Full forward (mirrors FineTuneClassifierPhi.forward)
# ----------------------------------------------------------------------------
def finetune_classifier_phi_forward(input_ids, attention_mask, params, head):
    hidden = synthetic_base_model(input_ids, attention_mask,
                                  params["embed"], params["mix_w"])
    return classifier_head(hidden, head)


def reference_forward(input_ids, attention_mask, params):
    # Pure-JAX reference of the classifier head (module semantics).
    hidden = synthetic_base_model(input_ids, attention_mask,
                                  params["embed"], params["mix_w"])
    B, T, C = hidden.shape
    h32 = hidden.astype(jnp.float32)
    last = jnp.broadcast_to(h32[:, -1:, :], (B, T, C))
    combined = jnp.concatenate([h32, last], axis=-1)              # (B, T, 2C)
    return jnp.einsum("btk,lk->btl", combined,
                      params["cls_w"]) + params["cls_b"]


if __name__ == "__main__":
    # Small, module-consistent shapes.
    B, T, C = 2, 8, 32          # batch, seq len, base-model hidden size
    num_labels = 4
    vocab = 64

    key = jax.random.PRNGKey(0)
    k_ids, k_emb, k_mix, k_w, k_b = jax.random.split(key, 5)

    input_ids = jax.random.randint(k_ids, (B, T), 0, vocab, dtype=jnp.int32)
    attention_mask = jnp.ones((B, T), dtype=jnp.int32)

    params = {
        # frozen synthetic base model params
        "embed": (jax.random.normal(k_emb, (vocab, C), jnp.float32) * 0.1
                  ).astype(jnp.bfloat16),
        "mix_w": jax.random.normal(k_mix, (C, C), jnp.float32) * 0.05,
        # trainable classifier head: nn.Linear(2C, num_labels)
        "cls_w": jax.random.normal(k_w, (num_labels, 2 * C), jnp.float32) * 0.02,
        "cls_b": jax.random.normal(k_b, (num_labels,), jnp.float32) * 0.01,
    }

    # Weight prep done once (not per forward).
    head = prepare_classifier_head(params["cls_w"], params["cls_b"], C)
    head = jax.tree_util.tree_map(
        lambda x: jax.block_until_ready(x) if isinstance(x, jax.Array) else x, head)

    logits = finetune_classifier_phi_forward(input_ids, attention_mask, params, head)
    logits = jax.block_until_ready(logits)

    ref = reference_forward(input_ids, attention_mask, params)
    assert logits.shape == (B, T, num_labels)
    # bf16 weight rounding in the kernel path vs f32 reference -> small slack.
    assert jnp.allclose(logits, ref, atol=2e-3, rtol=2e-2), "mismatch vs reference"

    print("KERNEL_OK")
</pallas_src>

<mosaic_0001>
module attributes {stable_mosaic.version = 11 : i64} {
  func.func @classifier_head_kernel(%arg0: i32, %arg1: i32, %arg2: memref<1x8x32xbf16, #tpu.memory_space<vmem>>, %arg3: memref<32x128xbf16, #tpu.memory_space<vmem>>, %arg4: memref<1x1x128xf32, #tpu.memory_space<vmem>>, %arg5: memref<1x8x128xf32, #tpu.memory_space<vmem>>) attributes {dimension_semantics = [#tpu.dimension_semantics<parallel>, #tpu.dimension_semantics<parallel>], iteration_bounds = array<i64: 2, 1>, scalar_prefetch = 0 : i64, scratch_operands = 0 : i64, tpu.core_type = #tpu.core_type<tc>, window_params = [{transform_indices = @transform_0, window_bounds = array<i64: 1, 8, 32>}, {pipeline_mode = #tpu.pipeline_mode<synchronous>, transform_indices = @transform_1, window_bounds = array<i64: 32, 128>}, {transform_indices = @transform_2, window_bounds = array<i64: 1, 1, 128>}, {transform_indices = @transform_3, window_bounds = array<i64: 1, 8, 128>}]} {
    %c0 = arith.constant 0 : index
    %c0_0 = arith.constant 0 : index
    %c0_1 = arith.constant 0 : index
    %0 = vector.load %arg2[%c0, %c0_0, %c0_1] : memref<1x8x32xbf16, #tpu.memory_space<vmem>>, vector<1x8x32xbf16>
    %1 = vector.shape_cast %0 : vector<1x8x32xbf16> to vector<8x32xbf16>
    %c0_2 = arith.constant 0 : index
    %c0_3 = arith.constant 0 : index
    %2 = vector.load %arg3[%c0_2, %c0_3] : memref<32x128xbf16, #tpu.memory_space<vmem>>, vector<32x128xbf16>
    %cst = arith.constant dense<0.000000e+00> : vector<8x128xf32>
    %3 = tpu.matmul %1, %2, %cst {dimension_numbers = #tpu.dot_dimension_numbers<[1], [0], [0], [1], [0, 0, 1, 1], [], []>} : vector<8x32xbf16>, vector<32x128xbf16>, vector<8x128xf32> -> vector<8x128xf32>
    %c0_4 = arith.constant 0 : index
    %c0_5 = arith.constant 0 : index
    %c0_6 = arith.constant 0 : index
    %4 = vector.load %arg4[%c0_4, %c0_5, %c0_6] : memref<1x1x128xf32, #tpu.memory_space<vmem>>, vector<1x1x128xf32>
    %5 = vector.shape_cast %4 : vector<1x1x128xf32> to vector<1x128xf32>
    %6 = vector.broadcast %5 : vector<1x128xf32> to vector<8x128xf32>
    %7 = arith.addf %3, %6 : vector<8x128xf32>
    %c0_7 = arith.constant 0 : index
    %c0_8 = arith.constant 0 : index
    %c0_9 = arith.constant 0 : index
    %8 = vector.load %arg5[%c0_7, %c0_8, %c0_9] : memref<1x8x128xf32, #tpu.memory_space<vmem>>, vector<1x8x128xf32>
    %9 = vector.shape_cast %8 : vector<1x8x128xf32> to vector<8x128xf32>
    %10 = vector.shape_cast %7 : vector<8x128xf32> to vector<1x8x128xf32>
    tpu.vector_store %arg5[%c0_7, %c0_8, %c0_9], %10 {strides = array<i32>} : memref<1x8x128xf32, #tpu.memory_space<vmem>>, vector<1x8x128xf32>,
    return
  }
  func.func @transform_0(%arg0: i32, %arg1: i32) -> (i32, i32, i32) {
    %c0_i32 = arith.constant 0 : i32
    %c0_i32_0 = arith.constant 0 : i32
    return %arg0, %arg1, %c0_i32 : i32, i32, i32
  }
  func.func @transform_1(%arg0: i32, %arg1: i32) -> (i32, i32) {
    %c0_i32 = arith.constant 0 : i32
    %c0_i32_0 = arith.constant 0 : i32
    %c0_i32_1 = arith.constant 0 : i32
    return %c0_i32, %c0_i32_0 : i32, i32
  }
  func.func @transform_2(%arg0: i32, %arg1: i32) -> (i32, i32, i32) {
    %c0_i32 = arith.constant 0 : i32
    %c0_i32_0 = arith.constant 0 : i32
    %c0_i32_1 = arith.constant 0 : i32
    return %arg0, %c0_i32, %c0_i32_0 : i32, i32, i32
  }
  func.func @transform_3(%arg0: i32, %arg1: i32) -> (i32, i32, i32) {
    %c0_i32 = arith.constant 0 : i32
    %c0_i32_0 = arith.constant 0 : i32
    return %arg0, %arg1, %c0_i32 : i32, i32, i32
  }
}

module attributes {stable_mosaic.version = 11 : i64} {
  func.func @classifier_head_kernel(%arg0: i32, %arg1: i32, %arg2: memref<1x8x32xbf16, #tpu.memory_space<vmem>>, %arg3: memref<32x128xbf16, #tpu.memory_space<vmem>>, %arg4: memref<1x1x128xf32, #tpu.memory_space<vmem>>, %arg5: memref<1x8x128xf32, #tpu.memory_space<vmem>>) attributes {dimension_semantics = [#tpu.dimension_semantics<parallel>, #tpu.dimension_semantics<parallel>], iteration_bounds = array<i64: 2, 1>, scalar_prefetch = 0 : i64, scratch_operands = 0 : i64, tpu.core_type = #tpu.core_type<tc>, window_params = [{transform_indices = @transform_0, window_bounds = array<i64: 1, 8, 32>}, {pipeline_mode = #tpu.pipeline_mode<synchronous>, transform_indices = @transform_1, window_bounds = array<i64: 32, 128>}, {transform_indices = @transform_2, window_bounds = array<i64: 1, 1, 128>}, {transform_indices = @transform_3, window_bounds = array<i64: 1, 8, 128>}]} {
    %c0 = arith.constant 0 : index
    %c0_0 = arith.constant 0 : index
    %c0_1 = arith.constant 0 : index
    %0 = vector.load %arg2[%c0, %c0_0, %c0_1] : memref<1x8x32xbf16, #tpu.memory_space<vmem>>, vector<1x8x32xbf16>
    %1 = vector.shape_cast %0 : vector<1x8x32xbf16> to vector<8x32xbf16>
    %c0_2 = arith.constant 0 : index
    %c0_3 = arith.constant 0 : index
    %2 = vector.load %arg3[%c0_2, %c0_3] : memref<32x128xbf16, #tpu.memory_space<vmem>>, vector<32x128xbf16>
    %cst = arith.constant dense<0.000000e+00> : vector<8x128xf32>
    %3 = tpu.matmul %1, %2, %cst {dimension_numbers = #tpu.dot_dimension_numbers<[1], [0], [0], [1], [0, 0, 1, 1], [], []>} : vector<8x32xbf16>, vector<32x128xbf16>, vector<8x128xf32> -> vector<8x128xf32>
    %c0_4 = arith.constant 0 : index
    %c0_5 = arith.constant 0 : index
    %c0_6 = arith.constant 0 : index
    %4 = vector.load %arg4[%c0_4, %c0_5, %c0_6] : memref<1x1x128xf32, #tpu.memory_space<vmem>>, vector<1x1x128xf32>
    %5 = vector.shape_cast %4 : vector<1x1x128xf32> to vector<1x128xf32>
    %6 = vector.broadcast %5 : vector<1x128xf32> to vector<8x128xf32>
    %7 = arith.addf %3, %6 : vector<8x128xf32>
    %c0_7 = arith.constant 0 : index
    %c0_8 = arith.constant 0 : index
    %c0_9 = arith.constant 0 : index
    %8 = vector.load %arg5[%c0_7, %c0_8, %c0_9] : memref<1x8x128xf32, #tpu.memory_space<vmem>>, vector<1x8x128xf32>
    %9 = vector.shape_cast %8 : vector<1x8x128xf32> to vector<8x128xf32>
    %10 = vector.shape_cast %7 : vector<8x128xf32> to vector<1x8x128xf32>
    tpu.vector_store %arg5[%c0_7, %c0_8, %c0_9], %10 {strides = array<i32>} : memref<1x8x128xf32, #tpu.memory_space<vmem>>, vector<1x8x128xf32>,
    return
  }
  func.func @transform_0(%arg0: i32, %arg1: i32) -> (i32, i32, i32) {
    %c0_i32 = arith.constant 0 : i32
    %c0_i32_0 = arith.constant 0 : i32
    return %arg0, %arg1, %c0_i32 : i32, i32, i32
  }
  func.func @transform_1(%arg0: i32, %arg1: i32) -> (i32, i32) {
    %c0_i32 = arith.constant 0 : i32
    %c0_i32_0 = arith.constant 0 : i32
    %c0_i32_1 = arith.constant 0 : i32
    return %c0_i32, %c0_i32_0 : i32, i32
  }
  func.func @transform_2(%arg0: i32, %arg1: i32) -> (i32, i32, i32) {
    %c0_i32 = arith.constant 0 : i32
    %c0_i32_0 = arith.constant 0 : i32
    %c0_i32_1 = arith.constant 0 : i32
    return %arg0, %c0_i32, %c0_i32_0 : i32, i32, i32
  }
  func.func @transform_3(%arg0: i32, %arg1: i32) -> (i32, i32, i32) {
    %c0_i32 = arith.constant 0 : i32
    %c0_i32_0 = arith.constant 0 : i32
    return %arg0, %arg1, %c0_i32 : i32, i32, i32
  }
}

</mosaic_0001>

<bundles_post_ra>
// kernel: tpu_custom_call.1
= control target key start
LH: loop header
LB: loop body
LE: loop exit
PB: predicated region body
PF: predicated region fallthrough
CT: control target
= control target key end

     0   :  { %8 = vsyncpa [#allocation3], 0  ;;  %s897_s0 = inlined_call_operand.hbm [shape: bf16[2,8,32], index: 0, kind: input, shape index: {}]   ;;  %s898_s1 = inlined_call_operand.hbm [shape: bf16[32,128], index: 1, kind: input, shape index: {}]   ;;  %s899_s2 = inlined_call_operand.hbm [shape: f32[2,1,128], index: 2, kind: input, shape index: {}]   ;;  %s900_s3 = inlined_call_operand.hbm [shape: f32[2,8,128], index: 3, kind: output, shape index: {}]  }
   0x1   :  { %10 = vsyncpa [#allocation3 + $0x1], 0 }
   0x2   :  { %11 = vsyncpa [#allocation6], 0 }
   0x3   :  { %12 = vsyncpa [#allocation4], 0 }
   0x4   :  { %14 = vsyncpa [#allocation4 + $0x1], 0  ;;  %s729_s12 = smov 0   ;;  %s731_s13 = smov 0  }
   0x5   :  { %s733_s14 = smov 0   ;;  %s735_s15 = smov 0  }
   0x6   :  { %s737_s16 = smov 0   ;;  %s739_s17 = smov 0  }
   0x7 LB: > { %s760_s18 = sadd.s32 4294967295, %s704_s17   ;;  %s418_s19 = sadd.s32 4294967294, %s704_s17   ;;  %s704_s17 = sphi %s739_s17, %s20_s17   ;;  %s700_s16 = sphi %s737_s16, %s911_s16   ;;  %s696_s15 = sphi %s735_s15, %s910_s15   ;;  %s692_s14 = sphi %s733_s14, %s909_s14   ;;  %s688_s13 = sphi %s731_s13, %s908_s13   ;;  %s684_s12 = sphi %s729_s12, %s907_s12  }
   0x8   : > { %s32_s20 = sadd.s32 1, %s700_s16  ;;  %s41_s21 = sadd.s32 1, %s692_s14 }
   0x9   : > { %p34_p0 = scmp.ge.s32.totalorder %s32_s20, 2  ;;  %p48_p1 = scmp.ne.s32.totalorder %s692_s14, %s688_s13 }
   0xa   : > { %p49_p2 = scmp.eq.s32.totalorder %s704_s17, 0  ;;  %p54_p3 = scmp.ne.s32.totalorder %s688_s13, %s684_s12 }
   0xb   : > { %s913_s20 = smov (%p34_p0, %s32_s20), 0  ;;  %p127_p5 = scmp.eq.s32.totalorder %s760_s18, 1 }
   0xc   : > { %p772_p4 = por %p49_p2, %p48_p1  ;;  %s36_s23 = ssub.s32 %s700_s16, %s913_s20 }
   0xd   : > { %p133_p6 = scmp.eq.s32.totalorder %s418_s19, 1  ;;  %p39_p7 = scmp.eq.s32.totalorder %s36_s23, 0 }
   0xe   : > { %p779_p8 = por %p127_p5, %p48_p1  ;;  %p421_p10 = scmp.ge.s32.totalorder %s704_s17, 2 }
   0xf   : > { %p786_p9 = por %p133_p6, %p54_p3  ;;  %p469_p11 = scmp.lt.s32.totalorder %s704_s17, 2 }
  0x10   : > { %s791_s26 = scalar_select %p39_p7, %s692_s14, %s41_s21  }
  0x11   : > { %s167_s27 = sand.u32 1, %s704_s17   ;;  %s169_s28 = sand.u32 1, %s692_s14  }
  0x12   : > { %s422_s29 = sshll.u32 %s169_s28, 2  ;;  %s423_s30 = sshll.u32 %s700_s16, 2 }
  0x13   : > { %s176_s6 = scalar_lea.hbm %s897_s0, %s423_s30  ;;  %s171_s7 = scalar_lea.vmem [#allocation2], %s422_s29 }
  0x14   : > { %s180_s8 = sshll.u32 %s171_s7, 4  ;;  %s178_s9 = sshll.u32 %s176_s6, 4  ;;  %s181_s8 = int_to_ptr.vmem [resolvable:$true] %s180_s8  ;;  %s179_s9 = int_to_ptr.hbm [resolvable:$true] %s178_s9 }
  0x15   : > { %p803_p12 = pnand %p469_p11, %p772_p4  ;;  %p55_p13 = scmp.eq.s32.totalorder %s760_s18, 0 }
  0x16   : > { %s168_s11 = scalar_lea.sflag [#allocation3], %s167_s27  ;;  %p419_p1 = scmp.ge.s32.totalorder %s704_s17, 1 }
  0x17   : > { %460 = dma.hbm_to_vmem [thread:$0]  (!%p803_p12), %s179_s9, 64, %s181_s8, %s168_s11  }
  0x18   : > { %p815_p0 = por %p55_p13, %p54_p3  ;;  %p140_p2 = scmp.lt.s32.totalorder %s704_s17, 3 }
  0x19   : > { %s151_s23 = sshll.u32 %s898_s1, 4  ;;  %s706_s27 = smov [#allocation5]   ;;  %s152_s23 = int_to_ptr.hbm [resolvable:$true] %s151_s23 }
  0x1a   : > { %p824_p4 = pnand %p419_p1, %p140_p2  ;;  %s153_s30 = sshll.u32 %s706_s27, 4  ;;  %s154_s30 = int_to_ptr.vmem [resolvable:$true] %s153_s30 }
  0x1b   : > { %s193_s6 = scalar_lea.hbm %s899_s2, %s700_s16  ;;  %s190_s8 = scalar_lea.vmem [#allocation7], %s169_s28 }
  0x1c   : > { %p453_p3 = pneg %p824_p4  ;;  %s195_s7 = sshll.u32 %s193_s6, 4  ;;  %s196_s7 = int_to_ptr.hbm [resolvable:$true] %s195_s7 }
  0x1d   : > { %s197_s9 = sshll.u32 %s190_s8, 4  ;;  %s707_s21 = smov 64   ;;  %s198_s9 = int_to_ptr.vmem [resolvable:$true] %s197_s9 }
  0x1e   : > { %p454_p5 = pnand %p453_p3, %p55_p13  ;;  %s708_s22 = smov 4  }
  0x1f   : > { %463 = dma.hbm_to_vmem [thread:$0]  (!%p803_p12), %s196_s7, 16, %s198_s9, %s168_s11  }
  0x20   : > { %456 = dma.hbm_to_vmem [thread:$0]  (!%p454_p5), %s152_s23, 256, %s154_s30, [#allocation6], %s707_s21, %s707_s21, %s708_s22  }
  0x21   : > { %206 = sbr.rel (%p824_p4) target bundleno = 185 (0xb9), region = 32  ;;  %s208_s27 = sand.u32 (!%p824_p4), 1, %s760_s18  }
  0x22   : > { %s842_s4 = sand.u32 (!%p824_p4), 1, %s688_s13   ;;  %s209_s6 = scalar_lea.sflag (!%p824_p4), [#allocation3], %s208_s27 }
  0x23   : > { %s425_s5 = sshll.u32 (!%p824_p4), %s842_s4, 2 }
  0x24   : > { %s212_s28 = scalar_lea.vmem (!%p824_p4), [#allocation2], %s425_s5 }
  0x26   : > { %667 = dma.done.wait (%p815_p0), %s209_s6, 64  }
  0x27   : > { %669 = vsyncadd (%p815_p0), %s209_s6, 4294967232 }
  0x28   : > { %671 = dma.done.wait (%p55_p13), [#allocation6], 256  }
  0x29   : > { %673 = vsyncadd (%p55_p13), [#allocation6], 4294967040  ;;  %s226_s10 = scalar_lea.vmem [#allocation7], %s842_s4 }
  0x2a   : > { %675 = dma.done.wait (%p815_p0), %s209_s6, 16  }
  0x2b   : > { %677 = vsyncadd (%p815_p0), %s209_s6, 4294967280  ;;  %v442_v0 = vld [vmem:[#allocation5 + $0x8] sm:$0xff]  ;;  %v441_v1 = vld [vmem:[#allocation5] sm:$0xff]  ;;  %vm276_vm0 = vcmask 261120   ;;  %s438_s18 = sshll.u32 %s696_s15, 3  ;;  %s427_s11 = sshll.u32 %s842_s4, 3 }
  0x2c   : > { %286 = vmatpush.bf16.msra.mxu0 %v442_v0  ;;  %v255_v2 = vld [vmem:[%s212_s28] sm:$0xf]  ;;  %s306_s30 = scalar_lea.hbm %s900_s3, %s438_s18  ;;  %s253_s19 = scalar_lea.vmem [#allocation8], %s427_s11 }
  0x2d   : > { %v523_v3 = vld [vmem:[%s226_s10] ss:$0 sm:$0xff]  ;;  %s308_s7 = sshll.u32 %s253_s19, 4  ;;  %s310_s8 = sshll.u32 %s306_s30, 4  ;;  %s309_s7 = int_to_ptr.vmem [resolvable:$true] %s308_s7  ;;  %s311_s8 = int_to_ptr.hbm [resolvable:$true] %s310_s8 }
  0x2e   : > { %s295_s9 = scalar_lea.sflag [#allocation4], %s842_s4  ;;  %s628_s21 = sshra.s32 %s311_s8, 4  ;;  %s629_s21 = int_to_ptr.hbm [resolvable:$true] %s628_s21 }
  0x2f   : > { %s630_s22 = scalar_lea.hbm %s629_s21, 8  ;;  %s634_s5 = scalar_lea.hbm %s900_s3, 16 }
  0x30   : > { %287 = vmatpush.bf16.msra.mxu0 %v441_v1  ;;  %p631_p6 = scmp.ne.s32.totalorder %s629_s21, %s630_s22  ;;  %p635_p12 = scmp.lt.s32.totalorder %s629_s21, %s900_s3 }
  0x31   : > { %p636_p13 = scmp.lt.s32.totalorder %s634_s5, %s630_s22 }
  0x32   : > { %p632_p7 = pnand %p631_p6, %p779_p8 }
  0x33   : > { %436 = vmatmul.msk.bf16.vlgmr.msra.gmra.mxu0 %vm276_vm0, %v255_v2  ;;  %p637_p0 = por %p636_p13, %p635_p12 }
  0x34   : > { %p633_p11 = pneg %p632_p7 }
  0x36   : > { %p638_p1 = pnand %p637_p0, %p633_p11 }
  0xb0   : > { %v289_v4 = vpop.f32.mrf.mxu0 }
  0xb1   : > { %v290_v5 = vadd.f32 %v523_v3, %v289_v4 }
  0xb3   : > { %293 = vst [vmem:[%s253_s19] sm:$0xff] %v290_v5 }
  0xb4   : > { %641 = shalt.err (!%p638_p1)
}
  0xb5   : > { %451 = dma.vmem_to_hbm [thread:$0]  (%p779_p8), %s309_s7, 128, %s311_s8, %s295_s9  }
  0xb8   : > { %v291_v6 = vpop.f32.mrf.mxu0 }
  0xb9 PF: > { %s322_s4 = sand.u32 1, %s684_s12   ;;  %p465_p2 = pnand %p421_p10, %p786_p9 }
  0xba   : > { %s323_s10 = scalar_lea.sflag [#allocation4], %s322_s4 }
  0xbb   : > { %p466_p4 = pneg %p465_p2 }
  0xbd   : > { %679 = dma.done.wait (%p466_p4), %s323_s10, 128  }
  0xbe   : > { %681 = vsyncadd (%p466_p4), %s323_s10, 4294967168  ;;  %s20_s17 = sadd.s32 1, %s704_s17   ;;  %s907_s12 = smov %s688_s13 }
  0xbf   : > { %p17_p3 = scmp.ge.s32.totalorder %s20_s17, 4   ;;  %s908_s13 = smov %s692_s14 }
  0xc0   : > { %s909_s14 = smov %s791_s26  ;;  %s910_s15 = smov %s700_s16 }
  0xc1   : > { %s911_s16 = smov %s913_s20  ;;  %19 = sbr.rel (!%p17_p3) target bundleno = 7 (0x7), region = 92 }
  0xc6   :  { %329 = vsyncpa [#allocation3], 1 }
  0xc7   :  { %331 = vsyncpa [#allocation3 + $0x1], 1 }
  0xc8   :  { %332 = vsyncpa [#allocation6], 1 }
  0xc9   :  { %333 = vsyncpa [#allocation4], 1 }
  0xca   :  { %335 = vsyncpa [#allocation4 + $0x1], 1 }

// kernel: tpu_custom_call.1
= control target key start
LH: loop header
LB: loop body
LE: loop exit
PB: predicated region body
PF: predicated region fallthrough
CT: control target
= control target key end

     0   :  { %8 = vsyncpa [#allocation3], 0  ;;  %s897_s0 = inlined_call_operand.hbm [shape: bf16[2,8,32], index: 0, kind: input, shape index: {}]   ;;  %s898_s1 = inlined_call_operand.hbm [shape: bf16[32,128], index: 1, kind: input, shape index: {}]   ;;  %s899_s2 = inlined_call_operand.hbm [shape: f32[2,1,128], index: 2, kind: input, shape index: {}]   ;;  %s900_s3 = inlined_call_operand.hbm [shape: f32[2,8,128], index: 3, kind: output, shape index: {}]  }
   0x1   :  { %10 = vsyncpa [#allocation3 + $0x1], 0 }
   0x2   :  { %11 = vsyncpa [#allocation6], 0 }
   0x3   :  { %12 = vsyncpa [#allocation4], 0 }
   0x4   :  { %14 = vsyncpa [#allocation4 + $0x1], 0  ;;  %s729_s12 = smov 0   ;;  %s731_s13 = smov 0  }
   0x5   :  { %s733_s14 = smov 0   ;;  %s735_s15 = smov 0  }
   0x6   :  { %s737_s16 = smov 0   ;;  %s739_s17 = smov 0  }
   0x7 LB: > { %s760_s18 = sadd.s32 4294967295, %s704_s17   ;;  %s418_s19 = sadd.s32 4294967294, %s704_s17   ;;  %s704_s17 = sphi %s739_s17, %s20_s17   ;;  %s700_s16 = sphi %s737_s16, %s911_s16   ;;  %s696_s15 = sphi %s735_s15, %s910_s15   ;;  %s692_s14 = sphi %s733_s14, %s909_s14   ;;  %s688_s13 = sphi %s731_s13, %s908_s13   ;;  %s684_s12 = sphi %s729_s12, %s907_s12  }
   0x8   : > { %s32_s20 = sadd.s32 1, %s700_s16  ;;  %s41_s21 = sadd.s32 1, %s692_s14 }
   0x9   : > { %p34_p0 = scmp.ge.s32.totalorder %s32_s20, 2  ;;  %p48_p1 = scmp.ne.s32.totalorder %s692_s14, %s688_s13 }
   0xa   : > { %p49_p2 = scmp.eq.s32.totalorder %s704_s17, 0  ;;  %p54_p3 = scmp.ne.s32.totalorder %s688_s13, %s684_s12 }
   0xb   : > { %s913_s20 = smov (%p34_p0, %s32_s20), 0  ;;  %p127_p5 = scmp.eq.s32.totalorder %s760_s18, 1 }
   0xc   : > { %p772_p4 = por %p49_p2, %p48_p1  ;;  %s36_s23 = ssub.s32 %s700_s16, %s913_s20 }
   0xd   : > { %p133_p6 = scmp.eq.s32.totalorder %s418_s19, 1  ;;  %p39_p7 = scmp.eq.s32.totalorder %s36_s23, 0 }
   0xe   : > { %p779_p8 = por %p127_p5, %p48_p1  ;;  %p421_p10 = scmp.ge.s32.totalorder %s704_s17, 2 }
   0xf   : > { %p786_p9 = por %p133_p6, %p54_p3  ;;  %p469_p11 = scmp.lt.s32.totalorder %s704_s17, 2 }
  0x10   : > { %s791_s26 = scalar_select %p39_p7, %s692_s14, %s41_s21  }
  0x11   : > { %s167_s27 = sand.u32 1, %s704_s17   ;;  %s169_s28 = sand.u32 1, %s692_s14  }
  0x12   : > { %s422_s29 = sshll.u32 %s169_s28, 2  ;;  %s423_s30 = sshll.u32 %s700_s16, 2 }
  0x13   : > { %s176_s6 = scalar_lea.hbm %s897_s0, %s423_s30  ;;  %s171_s7 = scalar_lea.vmem [#allocation2], %s422_s29 }
  0x14   : > { %s180_s8 = sshll.u32 %s171_s7, 4  ;;  %s178_s9 = sshll.u32 %s176_s6, 4  ;;  %s181_s8 = int_to_ptr.vmem [resolvable:$true] %s180_s8  ;;  %s179_s9 = int_to_ptr.hbm [resolvable:$true] %s178_s9 }
  0x15   : > { %p803_p12 = pnand %p469_p11, %p772_p4  ;;  %p55_p13 = scmp.eq.s32.totalorder %s760_s18, 0 }
  0x16   : > { %s168_s11 = scalar_lea.sflag [#allocation3], %s167_s27  ;;  %p419_p1 = scmp.ge.s32.totalorder %s704_s17, 1 }
  0x17   : > { %460 = dma.hbm_to_vmem [thread:$0]  (!%p803_p12), %s179_s9, 64, %s181_s8, %s168_s11  }
  0x18   : > { %p815_p0 = por %p55_p13, %p54_p3  ;;  %p140_p2 = scmp.lt.s32.totalorder %s704_s17, 3 }
  0x19   : > { %s151_s23 = sshll.u32 %s898_s1, 4  ;;  %s706_s27 = smov [#allocation5]   ;;  %s152_s23 = int_to_ptr.hbm [resolvable:$true] %s151_s23 }
  0x1a   : > { %p824_p4 = pnand %p419_p1, %p140_p2  ;;  %s153_s30 = sshll.u32 %s706_s27, 4  ;;  %s154_s30 = int_to_ptr.vmem [resolvable:$true] %s153_s30 }
  0x1b   : > { %s193_s6 = scalar_lea.hbm %s899_s2, %s700_s16  ;;  %s190_s8 = scalar_lea.vmem [#allocation7], %s169_s28 }
  0x1c   : > { %p453_p3 = pneg %p824_p4  ;;  %s195_s7 = sshll.u32 %s193_s6, 4  ;;  %s196_s7 = int_to_ptr.hbm [resolvable:$true] %s195_s7 }
  0x1d   : > { %s197_s9 = sshll.u32 %s190_s8, 4  ;;  %s707_s21 = smov 64   ;;  %s198_s9 = int_to_ptr.vmem [resolvable:$true] %s197_s9 }
  0x1e   : > { %p454_p5 = pnand %p453_p3, %p55_p13  ;;  %s708_s22 = smov 4  }
  0x1f   : > { %463 = dma.hbm_to_vmem [thread:$0]  (!%p803_p12), %s196_s7, 16, %s198_s9, %s168_s11  }
  0x20   : > { %456 = dma.hbm_to_vmem [thread:$0]  (!%p454_p5), %s152_s23, 256, %s154_s30, [#allocation6], %s707_s21, %s707_s21, %s708_s22  }
  0x21   : > { %206 = sbr.rel (%p824_p4) target bundleno = 185 (0xb9), region = 32  ;;  %s208_s27 = sand.u32 (!%p824_p4), 1, %s760_s18  }
  0x22   : > { %s842_s4 = sand.u32 (!%p824_p4), 1, %s688_s13   ;;  %s209_s6 = scalar_lea.sflag (!%p824_p4), [#allocation3], %s208_s27 }
  0x23   : > { %s425_s5 = sshll.u32 (!%p824_p4), %s842_s4, 2 }
  0x24   : > { %s212_s28 = scalar_lea.vmem (!%p824_p4), [#allocation2], %s425_s5 }
  0x26   : > { %667 = dma.done.wait (%p815_p0), %s209_s6, 64  }
  0x27   : > { %669 = vsyncadd (%p815_p0), %s209_s6, 4294967232 }
  0x28   : > { %671 = dma.done.wait (%p55_p13), [#allocation6], 256  }
  0x29   : > { %673 = vsyncadd (%p55_p13), [#allocation6], 4294967040  ;;  %s226_s10 = scalar_lea.vmem [#allocation7], %s842_s4 }
  0x2a   : > { %675 = dma.done.wait (%p815_p0), %s209_s6, 16  }
  0x2b   : > { %677 = vsyncadd (%p815_p0), %s209_s6, 4294967280  ;;  %v442_v0 = vld [vmem:[#allocation5 + $0x8] sm:$0xff]  ;;  %v441_v1 = vld [vmem:[#allocation5] sm:$0xff]  ;;  %vm276_vm0 = vcmask 261120   ;;  %s438_s18 = sshll.u32 %s696_s15, 3  ;;  %s427_s11 = sshll.u32 %s842_s4, 3 }
  0x2c   : > { %286 = vmatpush.bf16.msra.mxu0 %v442_v0  ;;  %v255_v2 = vld [vmem:[%s212_s28] sm:$0xf]  ;;  %s306_s30 = scalar_lea.hbm %s900_s3, %s438_s18  ;;  %s253_s19 = scalar_lea.vmem [#allocation8], %s427_s11 }
  0x2d   : > { %v523_v3 = vld [vmem:[%s226_s10] ss:$0 sm:$0xff]  ;;  %s308_s7 = sshll.u32 %s253_s19, 4  ;;  %s310_s8 = sshll.u32 %s306_s30, 4  ;;  %s309_s7 = int_to_ptr.vmem [resolvable:$true] %s308_s7  ;;  %s311_s8 = int_to_ptr.hbm [resolvable:$true] %s310_s8 }
  0x2e   : > { %s295_s9 = scalar_lea.sflag [#allocation4], %s842_s4  ;;  %s628_s21 = sshra.s32 %s311_s8, 4  ;;  %s629_s21 = int_to_ptr.hbm [resolvable:$true] %s628_s21 }
  0x2f   : > { %s630_s22 = scalar_lea.hbm %s629_s21, 8  ;;  %s634_s5 = scalar_lea.hbm %s900_s3, 16 }
  0x30   : > { %287 = vmatpush.bf16.msra.mxu0 %v441_v1  ;;  %p631_p6 = scmp.ne.s32.totalorder %s629_s21, %s630_s22  ;;  %p635_p12 = scmp.lt.s32.totalorder %s629_s21, %s900_s3 }
  0x31   : > { %p636_p13 = scmp.lt.s32.totalorder %s634_s5, %s630_s22 }
  0x32   : > { %p632_p7 = pnand %p631_p6, %p779_p8 }
  0x33   : > { %436 = vmatmul.msk.bf16.vlgmr.msra.gmra.mxu0 %vm276_vm0, %v255_v2  ;;  %p637_p0 = por %p636_p13, %p635_p12 }
  0x34   : > { %p633_p11 = pneg %p632_p7 }
  0x36   : > { %p638_p1 = pnand %p637_p0, %p633_p11 }
  0xb0   : > { %v289_v4 = vpop.f32.mrf.mxu0 }
  0xb1   : > { %v290_v5 = vadd.f32 %v523_v3, %v289_v4 }
  0xb3   : > { %293 = vst [vmem:[%s253_s19] sm:$0xff] %v290_v5 }
  0xb4   : > { %641 = shalt.err (!%p638_p1)
}
  0xb5   : > { %451 = dma.vmem_to_hbm [thread:$0]  (%p779_p8), %s309_s7, 128, %s311_s8, %s295_s9  }
  0xb8   : > { %v291_v6 = vpop.f32.mrf.mxu0 }
  0xb9 PF: > { %s322_s4 = sand.u32 1, %s684_s12   ;;  %p465_p2 = pnand %p421_p10, %p786_p9 }
  0xba   : > { %s323_s10 = scalar_lea.sflag [#allocation4], %s322_s4 }
  0xbb   : > { %p466_p4 = pneg %p465_p2 }
  0xbd   : > { %679 = dma.done.wait (%p466_p4), %s323_s10, 128  }
  0xbe   : > { %681 = vsyncadd (%p466_p4), %s323_s10, 4294967168  ;;  %s20_s17 = sadd.s32 1, %s704_s17   ;;  %s907_s12 = smov %s688_s13 }
  0xbf   : > { %p17_p3 = scmp.ge.s32.totalorder %s20_s17, 4   ;;  %s908_s13 = smov %s692_s14 }
  0xc0   : > { %s909_s14 = smov %s791_s26  ;;  %s910_s15 = smov %s700_s16 }
  0xc1   : > { %s911_s16 = smov %s913_s20  ;;  %19 = sbr.rel (!%p17_p3) target bundleno = 7 (0x7), region = 92 }
  0xc6   :  { %329 = vsyncpa [#allocation3], 1 }
  0xc7   :  { %331 = vsyncpa [#allocation3 + $0x1], 1 }
  0xc8   :  { %332 = vsyncpa [#allocation6], 1 }
  0xc9   :  { %333 = vsyncpa [#allocation4], 1 }
  0xca   :  { %335 = vsyncpa [#allocation4 + $0x1], 1 }

</bundles_post_ra>
